<compile_context>
chip_gen: v7x
topology: tpu7x:2x2x1
jax: 0.10.0
libtpu: 0.0.40
codegen_flags: <defaults>
</compile_context>

<pallas_src>
import jax
import jax.numpy as jnp
from jax.experimental import pallas as pl
from jax.experimental.pallas import tpu as pltpu


# ---------------------------------------------------------------------------
# VMEM budgeting (generation-aware: v5e/v6e = 128 MiB, v7x = 64 MiB per core).
# ---------------------------------------------------------------------------

def _cdiv(a, b):
    return -(-a // b)


def _vmem_capacity_bytes():
    try:
        cap = int(pltpu.get_tpu_info().vmem_capacity_bytes)
        if cap > 0:
            return cap
    except Exception:
        pass
    return 64 * 1024 * 1024  # conservative fallback: v7x per-TensorCore VMEM


def _vmem_limit_bytes(need_bytes, cap):
    # Generous headroom above the working set, never above 3/4 of physical VMEM.
    return int(min(max(3 * need_bytes, 32 * 1024 * 1024), (cap * 3) // 4))


# ---------------------------------------------------------------------------
# Whole-MLP fused kernel (small stacks: weights resident in VMEM).
# ---------------------------------------------------------------------------

def _make_fused_mlp_kernel(n_layers, bias_flags, relu_flags, compute_dtype):
    def kernel(*refs):
        # refs = (x, w0, [b0], w1, [b1], ..., out)
        x_ref = refs[0]
        o_ref = refs[-1]
        h = x_ref[...]
        idx = 1
        for li in range(n_layers):
            w_ref = refs[idx]
            idx += 1
            lhs = h if compute_dtype is None else h.astype(compute_dtype)
            h = jnp.dot(lhs, w_ref[...], preferred_element_type=jnp.float32)
            if bias_flags[li]:
                b_ref = refs[idx]
                idx += 1
                h = h + b_ref[...].astype(jnp.float32)
            if relu_flags[li]:
                h = jnp.maximum(h, 0.0)
        o_ref[...] = h.astype(o_ref.dtype)

    return kernel


def _fused_mlp_plan(M, dims, in_itemsize, out_itemsize, budget):
    """Rows-per-step tm if the whole layer stack fits the VMEM budget, else None."""
    n_layers = len(dims) - 1
    w_bytes = 2 * sum(dims[i] * dims[i + 1] for i in range(n_layers)) * in_itemsize
    b_bytes = 2 * 8 * sum(dims[1:]) * 4          # worst-case f32 bias rows (padded)
    widest = max(dims)

    def act_bytes(tm_):
        return (2 * tm_ * dims[0] * in_itemsize      # double-buffered x block
                + 2 * tm_ * dims[-1] * out_itemsize  # double-buffered out block
                + 2 * tm_ * widest * 4)              # two live f32 intermediates

    tm = M if M <= 512 else 512
    while w_bytes + b_bytes + act_bytes(tm) > budget:
        if tm <= 8:
            return None
        tm = max(8, ((tm // 2) // 8) * 8)
    return tm


def _fused_mlp(x, weights, biases, relu_flags, *, compute_dtype, tm, cap):
    M, K0 = x.shape
    n_layers = len(weights)
    out_dtype = x.dtype
    dims = [K0] + [w.shape[1] for w in weights]

    if compute_dtype is not None:
        x = x.astype(compute_dtype)
        weights = [w.astype(compute_dtype) for w in weights]

    operands = [x]
    in_specs = [pl.BlockSpec((tm, K0), lambda i: (i, 0))]
    bias_flags = []
    for w, b in zip(weights, biases):
        operands.append(w)
        in_specs.append(pl.BlockSpec(w.shape, lambda i: (0, 0)))
        if b is not None:
            operands.append(b.reshape(1, -1).astype(jnp.float32))
            in_specs.append(pl.BlockSpec((1, int(b.shape[0])), lambda i: (0, 0)))
            bias_flags.append(True)
        else:
            bias_flags.append(False)

    n_out = dims[-1]
    in_isize = jnp.dtype(x.dtype).itemsize
    out_isize = jnp.dtype(out_dtype).itemsize
    need = (2 * sum(dims[i] * dims[i + 1] for i in range(n_layers)) * in_isize
            + 2 * tm * (dims[0] * in_isize + n_out * out_isize + max(dims) * 4))

    kernel = _make_fused_mlp_kernel(
        n_layers, tuple(bias_flags), tuple(relu_flags), compute_dtype)

    return pl.pallas_call(
        kernel,
        out_shape=jax.ShapeDtypeStruct((M, n_out), out_dtype),
        grid_spec=pltpu.PrefetchScalarGridSpec(
            num_scalar_prefetch=0,
            grid=(_cdiv(M, tm),),
            in_specs=in_specs,
            out_specs=pl.BlockSpec((tm, n_out), lambda i: (i, 0)),
            scratch_shapes=[],
        ),
        compiler_params=pltpu.CompilerParams(
            dimension_semantics=("parallel",),
            vmem_limit_bytes=_vmem_limit_bytes(need, cap),
        ),
    )(*operands)


# ---------------------------------------------------------------------------
# Per-layer tiled kernel (large layers that do not fit the fused budget).
# ---------------------------------------------------------------------------

def _make_tiled_kernel(has_bias, apply_relu, use_scratch):
    def kernel(*refs):
        if has_bias:
            x_ref, w_ref, b_ref = refs[0], refs[1], refs[2]
            rest = refs[3:]
        else:
            x_ref, w_ref = refs[0], refs[1]
            b_ref = None
            rest = refs[2:]
        if use_scratch:
            o_ref, acc_ref = rest
        else:
            (o_ref,) = rest
            acc_ref = o_ref          # f32 output: accumulate directly in-place

        k = pl.program_id(2)

        @pl.when(k == 0)
        def _():
            acc_ref[...] = jnp.zeros_like(acc_ref)

        acc_ref[...] += jnp.dot(
            x_ref[...], w_ref[...], preferred_element_type=jnp.float32)

        if has_bias or apply_relu or use_scratch:
            @pl.when(k == pl.num_programs(2) - 1)
            def _():
                y = acc_ref[...].astype(jnp.float32)
                if has_bias:
                    y = y + b_ref[...].astype(jnp.float32)
                if apply_relu:
                    y = jnp.maximum(y, 0.0)
                o_ref[...] = y.astype(o_ref.dtype)

    return kernel


def _choose_tiles(M, K, N, in_itemsize, out_itemsize, use_scratch, budget):
    """(8,128)-legal tiles bounded by `budget` bytes (double-buffered blocks)."""
    tm = M if M <= 512 else 512
    tn = N if N <= 1024 else 512           # single N block when small: x streamed once
    tk_cap = 2048

    def k_tile(cap):
        if K <= cap:
            return K
        t = (cap // 128) * 128
        while t >= 128:
            if K % t == 0:
                return t
            t -= 128
        return (cap // 128) * 128          # no aligned divisor: caller zero-pads K

    def bytes_needed(tm_, tn_, tk_):
        b = 2 * (tm_ * tk_ + tk_ * tn_) * in_itemsize   # double-buffered inputs
        b += 2 * tm_ * tn_ * out_itemsize               # double-buffered output
        b += 2 * 8 * tn_ * 4                            # bias row (sublane-padded)
        if use_scratch:
            b += tm_ * tn_ * 4
        return b

    while True:
        tk = k_tile(tk_cap)
        if bytes_needed(tm, tn, tk) <= budget:
            return tm, tn, tk
        if tk > 128 and tk_cap > 128:
            tk_cap = max(128, tk_cap // 2)
        elif tn > 128:
            tn = max(128, ((tn // 2) // 128) * 128)
        elif tm > 8:
            tm = max(8, ((tm // 2) // 8) * 8)
        else:
            return tm, tn, tk


def fused_linear(x, w, b=None, *, apply_relu=True, compute_dtype=None,
                 out_dtype=None, vmem_cap=None):
    """y = relu(x @ w + b) as a single tiled Pallas call (f32 MXU accumulation)."""
    if out_dtype is None:
        out_dtype = x.dtype
    if compute_dtype is not None:
        x = x.astype(compute_dtype)
        w = w.astype(compute_dtype)

    M, K = x.shape
    Kw, N = w.shape
    assert K == Kw, (K, Kw)

    cap = _vmem_capacity_bytes() if vmem_cap is None else vmem_cap
    budget = int(cap * 0.4)
    use_scratch = jnp.dtype(out_dtype) != jnp.float32
    in_isize = jnp.dtype(x.dtype).itemsize
    out_isize = jnp.dtype(out_dtype).itemsize
    tm, tn, tk = _choose_tiles(M, K, N, in_isize, out_isize, use_scratch, budget)

    # Zero-pad K only when no aligned divisor exists (zeros contribute nothing).
    kp = _cdiv(K, tk) * tk
    if kp != K:
        x = jnp.pad(x, ((0, 0), (0, kp - K)))
        w = jnp.pad(w, ((0, kp - K), (0, 0)))

    grid = (_cdiv(M, tm), _cdiv(N, tn), kp // tk)

    in_specs = [
        pl.BlockSpec((tm, tk), lambda i, j, k: (i, k)),
        pl.BlockSpec((tk, tn), lambda i, j, k: (k, j)),
    ]
    operands = [x, w]
    has_bias = b is not None
    if has_bias:
        in_specs.append(pl.BlockSpec((1, tn), lambda i, j, k: (0, j)))
        operands.append(b.reshape(1, N).astype(jnp.float32))

    scratch_shapes = [pltpu.VMEM((tm, tn), jnp.float32)] if use_scratch else []
    need = (2 * (tm * tk + tk * tn) * in_isize
            + 2 * tm * tn * out_isize
            + (tm * tn * 4 if use_scratch else 0))

    kernel = _make_tiled_kernel(has_bias, apply_relu, use_scratch)

    return pl.pallas_call(
        kernel,
        out_shape=jax.ShapeDtypeStruct((M, N), out_dtype),
        grid_spec=pltpu.PrefetchScalarGridSpec(
            num_scalar_prefetch=0,
            grid=grid,
            in_specs=in_specs,
            out_specs=pl.BlockSpec((tm, tn), lambda i, j, k: (i, j)),
            scratch_shapes=scratch_shapes,
        ),
        compiler_params=pltpu.CompilerParams(
            dimension_semantics=("parallel", "parallel", "arbitrary"),
            vmem_limit_bytes=_vmem_limit_bytes(need, cap),
        ),
    )(*operands)


# ---------------------------------------------------------------------------
# FullyConnectedBlock forward.
# ---------------------------------------------------------------------------

def fully_connected_block(x, weights, biases=None, *, apply_relu=None,
                          compute_dtype=None, force_per_layer=False):
    """Forward pass of FullyConnectedBlock.

    weights:       list of (in_features, out_features) matrices per Linear layer.
    biases:        list of (out_features,) vectors or None (default: no bias).
    apply_relu:    list of bool per layer (default: ReLU after every layer).
    compute_dtype: optional MXU dtype (e.g. jnp.bfloat16); accumulation stays f32,
                   output dtype stays x.dtype.  None = exact native-dtype math.
    """
    n_layers = len(weights)
    if biases is None:
        biases = [None] * n_layers
    if apply_relu is None:
        apply_relu = [True] * n_layers

    # torch: 4-D input is flattened to (N, C*H*W); reshape is metadata-only.
    if x.ndim == 4:
        x = x.reshape(x.shape[0], -1)

    orig_dtype = x.dtype
    cap = _vmem_capacity_bytes()
    budget = int(cap * 0.4)

    if not force_per_layer:
        dims = [x.shape[1]] + [w.shape[1] for w in weights]
        isz = jnp.dtype(compute_dtype if compute_dtype is not None else x.dtype).itemsize
        tm = _fused_mlp_plan(x.shape[0], dims, isz,
                             jnp.dtype(orig_dtype).itemsize, budget)
        if tm is not None:
            # Whole stack in ONE pallas_call: intermediates never touch HBM.
            return _fused_mlp(x, list(weights), list(biases), list(apply_relu),
                              compute_dtype=compute_dtype, tm=tm, cap=cap)

    # Large layers: one fused matmul (+bias+ReLU) Pallas call per layer.
    for li, (w, b, relu) in enumerate(zip(weights, biases, apply_relu)):
        last = li == n_layers - 1
        od = orig_dtype if (last or compute_dtype is None) else compute_dtype
        x = fused_linear(x, w, b, apply_relu=relu, compute_dtype=compute_dtype,
                         out_dtype=od, vmem_cap=cap)
    return x


if __name__ == "__main__":
    key = jax.random.PRNGKey(0)
    k_x, k_w1, k_w2, k_w3, k_b3 = jax.random.split(key, 5)

    # 1) Module default config on a 4-D input (whole MLP fuses into ONE call):
    #    FullyConnectedBlock(1024, 32, intermediate_channels=[64], bias=False)
    #    (2,4,16,16) -> flatten (2,1024) -> Linear(1024,64)+ReLU -> Linear(64,32)+ReLU
    x = jax.random.normal(k_x, (2, 4, 16, 16), dtype=jnp.float32)
    w1 = jax.random.normal(k_w1, (1024, 64), dtype=jnp.float32) * 0.03
    w2 = jax.random.normal(k_w2, (64, 32), dtype=jnp.float32) * 0.1

    out = jax.block_until_ready(fully_connected_block(x, [w1, w2]))

    xf = x.reshape(2, -1)
    ref = jnp.maximum(jnp.maximum(xf @ w1, 0.0) @ w2, 0.0)
    assert out.shape == (2, 32), out.shape
    assert out.dtype == x.dtype
    assert jnp.allclose(out, ref, atol=1e-4, rtol=1e-4), float(
        jnp.max(jnp.abs(out - ref)))

    # 2) Per-layer tiled path (bias=True), exercised explicitly at small shapes.
    x2 = jax.random.normal(k_x, (8, 512), dtype=jnp.float32)
    w3 = jax.random.normal(k_w3, (512, 256), dtype=jnp.float32) * 0.05
    b3 = jax.random.normal(k_b3, (256,), dtype=jnp.float32)
    out2 = jax.block_until_ready(
        fully_connected_block(x2, [w3], [b3], force_per_layer=True))
    ref2 = jnp.maximum(x2 @ w3 + b3, 0.0)
    assert out2.shape == (8, 256) and out2.dtype == x2.dtype
    assert jnp.allclose(out2, ref2, atol=1e-4, rtol=1e-4), float(
        jnp.max(jnp.abs(out2 - ref2)))

    print("KERNEL_OK")
</pallas_src>

<mosaic_0001>
module attributes {stable_mosaic.version = 11 : i64} {
  func.func @kernel(%arg0: i32, %arg1: memref<2x1024xf32, #tpu.memory_space<vmem>>, %arg2: memref<1024x64xf32, #tpu.memory_space<vmem>>, %arg3: memref<64x32xf32, #tpu.memory_space<vmem>>, %arg4: memref<2x32xf32, #tpu.memory_space<vmem>>) attributes {dimension_semantics = [#tpu.dimension_semantics<parallel>], iteration_bounds = array<i64: 1>, scalar_prefetch = 0 : i64, scratch_operands = 0 : i64, tpu.core_type = #tpu.core_type<tc>, window_params = [{transform_indices = @transform_0, window_bounds = array<i64: 2, 1024>}, {pipeline_mode = #tpu.pipeline_mode<synchronous>, transform_indices = @transform_1, window_bounds = array<i64: 1024, 64>}, {pipeline_mode = #tpu.pipeline_mode<synchronous>, transform_indices = @transform_2, window_bounds = array<i64: 64, 32>}, {transform_indices = @transform_3, window_bounds = array<i64: 2, 32>}]} {
    %c0 = arith.constant 0 : index
    %c0_0 = arith.constant 0 : index
    %0 = vector.load %arg1[%c0, %c0_0] : memref<2x1024xf32, #tpu.memory_space<vmem>>, vector<2x1024xf32>
    %c0_1 = arith.constant 0 : index
    %c0_2 = arith.constant 0 : index
    %1 = vector.load %arg2[%c0_1, %c0_2] : memref<1024x64xf32, #tpu.memory_space<vmem>>, vector<1024x64xf32>
    %cst = arith.constant dense<0.000000e+00> : vector<2x64xf32>
    %2 = tpu.matmul %0, %1, %cst {dimension_numbers = #tpu.dot_dimension_numbers<[1], [0], [0], [1], [0, 0, 1, 1], [], []>} : vector<2x1024xf32>, vector<1024x64xf32>, vector<2x64xf32> -> vector<2x64xf32>
    %cst_3 = arith.constant 0.000000e+00 : f32
    %3 = vector.broadcast %cst_3 : f32 to vector<2x64xf32>
    %4 = arith.maximumf %2, %3 : vector<2x64xf32>
    %c0_4 = arith.constant 0 : index
    %c0_5 = arith.constant 0 : index
    %5 = vector.load %arg3[%c0_4, %c0_5] : memref<64x32xf32, #tpu.memory_space<vmem>>, vector<64x32xf32>
    %cst_6 = arith.constant dense<0.000000e+00> : vector<2x32xf32>
    %6 = tpu.matmul %4, %5, %cst_6 {dimension_numbers = #tpu.dot_dimension_numbers<[1], [0], [0], [1], [0, 0, 1, 1], [], []>} : vector<2x64xf32>, vector<64x32xf32>, vector<2x32xf32> -> vector<2x32xf32>
    %cst_7 = arith.constant 0.000000e+00 : f32
    %7 = vector.broadcast %cst_7 : f32 to vector<2x32xf32>
    %8 = arith.maximumf %6, %7 : vector<2x32xf32>
    %c0_8 = arith.constant 0 : index
    %c0_9 = arith.constant 0 : index
    %9 = vector.load %arg4[%c0_8, %c0_9] : memref<2x32xf32, #tpu.memory_space<vmem>>, vector<2x32xf32>
    tpu.vector_store %arg4[%c0_8, %c0_9], %8 {strides = array<i32>} : memref<2x32xf32, #tpu.memory_space<vmem>>, vector<2x32xf32>,
    return
  }
  func.func @transform_0(%arg0: i32) -> (i32, i32) {
    %c0_i32 = arith.constant 0 : i32
    %c0_i32_0 = arith.constant 0 : i32
    return %arg0, %c0_i32 : i32, i32
  }
  func.func @transform_1(%arg0: i32) -> (i32, i32) {
    %c0_i32 = arith.constant 0 : i32
    %c0_i32_0 = arith.constant 0 : i32
    %c0_i32_1 = arith.constant 0 : i32
    return %c0_i32, %c0_i32_0 : i32, i32
  }
  func.func @transform_2(%arg0: i32) -> (i32, i32) {
    %c0_i32 = arith.constant 0 : i32
    %c0_i32_0 = arith.constant 0 : i32
    %c0_i32_1 = arith.constant 0 : i32
    return %c0_i32, %c0_i32_0 : i32, i32
  }
  func.func @transform_3(%arg0: i32) -> (i32, i32) {
    %c0_i32 = arith.constant 0 : i32
    %c0_i32_0 = arith.constant 0 : i32
    return %arg0, %c0_i32 : i32, i32
  }
}

</mosaic_0001>

<bundles_post_ra>
// kernel: tpu_custom_call.1
= control target key start
LH: loop header
LB: loop body
LE: loop exit
PB: predicated region body
PF: predicated region fallthrough
CT: control target
= control target key end

     0   :  { %v909_v47 = vmov 1983009808   ;;  %v151_v49 = vlaneseq  ;;  %s1371_s0 = inlined_call_operand.vmem [shape: f32[2,1024], index: 0, kind: input, shape index: {}]   ;;  %s1372_s1 = inlined_call_operand.vmem [shape: f32[1024,64], index: 1, kind: input, shape index: {}]   ;;  %s1373_s2 = inlined_call_operand.vmem [shape: f32[64,32], index: 2, kind: input, shape index: {}]   ;;  %s1374_s3 = inlined_call_operand.hbm [shape: f32[2,32], index: 3, kind: output, shape index: {}]  }
   0x1   :  { %v33_v0 = vld [vmem:[%s1372_s1 + $0x80] sm:$0xff]  ;;  %v34_v1 = vld [vmem:[%s1372_s1 + $0x88] sm:$0xff]  ;;  %v35_v11 = vld [vmem:[%s1372_s1 + $0x90] sm:$0xff]  ;;  %v149_v48 = vunpack.c.l.s4 %v909_v47 }
   0x2   :  { %v65_v2 = vld [vmem:[%s1372_s1 + $0x180] sm:$0xff]  ;;  %v738_v3 = vpack.c.bf16 %v34_v1, %v33_v0  ;;  %v66_v4 = vld [vmem:[%s1372_s1 + $0x188] sm:$0xff]  ;;  %v36_v13 = vld [vmem:[%s1372_s1 + $0x98] sm:$0xff]  ;;  %v152_v0 = vshrl.u32 %v151_v49, 7 }
   0x3   :  { %v17_v5 = vld [vmem:[%s1372_s1] sm:$0xff]  ;;  %v18_v6 = vld [vmem:[%s1372_s1 + $0x8] sm:$0xff]  ;;  %v770_v7 = vpack.c.bf16 %v66_v4, %v65_v2  ;;  %v67_v14 = vld [vmem:[%s1372_s1 + $0x190] sm:$0xff]  ;;  %v742_v16 = vpack.c.bf16 %v36_v13, %v35_v11  ;;  %v150_v63 = vunpack.c.0.s8 %v149_v48 }
   0x4   :  { %v740_v8 = vpack.c.bf16 %v18_v6, %v17_v5  ;;  %v49_v9 = vld [vmem:[%s1372_s1 + $0x100] sm:$0xff]  ;;  %v50_v10 = vld [vmem:[%s1372_s1 + $0x108] sm:$0xff]  ;;  %739 = vmatprep.subr.bf16.mxu0 %v738_v3  ;;  %v68_v15 = vld [vmem:[%s1372_s1 + $0x198] sm:$0xff] }
   0x5   :  { %v772_v12 = vpack.c.bf16 %v50_v10, %v49_v9  ;;  %771 = vmatprep.subr.bf16.mxu1 %v770_v7  ;;  %v774_v17 = vpack.c.bf16 %v68_v15, %v67_v14  ;;  %v19_v18 = vld [vmem:[%s1372_s1 + $0x10] sm:$0xff]  ;;  %v20_v19 = vld [vmem:[%s1372_s1 + $0x18] sm:$0xff]  ;;  %v37_v23 = vld [vmem:[%s1372_s1 + $0xa0] sm:$0xff]  ;;  %v1084_v13 = vsub.s32 %v150_v63, %v152_v0 }
   0x6   :  { %741 = vmatpush3.bf16.msra.mxu0 %v740_v8  ;;  %v51_v20 = vld [vmem:[%s1372_s1 + $0x110] sm:$0xff]  ;;  %v744_v21 = vpack.c.bf16 %v20_v19, %v19_v18  ;;  %v52_v22 = vld [vmem:[%s1372_s1 + $0x118] sm:$0xff]  ;;  %v38_v24 = vld [vmem:[%s1372_s1 + $0xa8] sm:$0xff] }
   0x7   :  { %773 = vmatpush3.bf16.msra.mxu1 %v772_v12  ;;  %743 = vmatprep.subr.bf16.mxu0 %v742_v16  ;;  %v776_v25 = vpack.c.bf16 %v52_v22, %v51_v20  ;;  %v746_v26 = vpack.c.bf16 %v38_v24, %v37_v23  ;;  %v69_v27 = vld [vmem:[%s1372_s1 + $0x1a0] sm:$0xff]  ;;  %v70_v28 = vld [vmem:[%s1372_s1 + $0x1a8] sm:$0xff]  ;;  %v39_v35 = vld [vmem:[%s1372_s1 + $0xb0] sm:$0xff] }
   0x8   :  { %775 = vmatprep.subr.bf16.mxu1 %v774_v17  ;;  %v21_v29 = vld [vmem:[%s1372_s1 + $0x20] sm:$0xff]  ;;  %v778_v30 = vpack.c.bf16 %v70_v28, %v69_v27  ;;  %v22_v31 = vld [vmem:[%s1372_s1 + $0x28] sm:$0xff]  ;;  %v40_v36 = vld [vmem:[%s1372_s1 + $0xb8] sm:$0xff] }
   0x9   :  { %v53_v32 = vld [vmem:[%s1372_s1 + $0x120] sm:$0xff]  ;;  %v54_v33 = vld [vmem:[%s1372_s1 + $0x128] sm:$0xff]  ;;  %v748_v34 = vpack.c.bf16 %v22_v31, %v21_v29  ;;  %v71_v37 = vld [vmem:[%s1372_s1 + $0x1b0] sm:$0xff]  ;;  %v750_v39 = vpack.c.bf16 %v40_v36, %v39_v35 }
   0xa   :  { %745 = vmatpush3.bf16.msra.mxu0 %v744_v21  ;;  %v780_v38 = vpack.c.bf16 %v54_v33, %v53_v32  ;;  %v72_v40 = vld [vmem:[%s1372_s1 + $0x1b8] sm:$0xff]  ;;  %v23_v41 = vld [vmem:[%s1372_s1 + $0x30] sm:$0xff]  ;;  %v41_v46 = vld [vmem:[%s1372_s1 + $0xc0] sm:$0xff] }
   0xb   :  { %777 = vmatpush3.bf16.msra.mxu1 %v776_v25  ;;  %747 = vmatprep.subr.bf16.mxu0 %v746_v26  ;;  %v24_v42 = vld [vmem:[%s1372_s1 + $0x38] sm:$0xff]  ;;  %v782_v43 = vpack.c.bf16 %v72_v40, %v71_v37  ;;  %v55_v44 = vld [vmem:[%s1372_s1 + $0x130] sm:$0xff]  ;;  %v42_v50 = vld [vmem:[%s1372_s1 + $0xc8] sm:$0xff] }
   0xc   :  { %779 = vmatprep.subr.bf16.mxu1 %v778_v30  ;;  %v56_v45 = vld [vmem:[%s1372_s1 + $0x138] sm:$0xff]  ;;  %v73_v51 = vld [vmem:[%s1372_s1 + $0x1c0] sm:$0xff]  ;;  %v74_v52 = vld [vmem:[%s1372_s1 + $0x1c8] sm:$0xff]  ;;  %v752_v53 = vpack.c.bf16 %v24_v42, %v23_v41  ;;  %v754_v55 = vpack.c.bf16 %v42_v50, %v41_v46 }
   0xd   :  { %v784_v54 = vpack.c.bf16 %v56_v45, %v55_v44  ;;  %v25_v56 = vld [vmem:[%s1372_s1 + $0x40] sm:$0xff]  ;;  %v26_v57 = vld [vmem:[%s1372_s1 + $0x48] sm:$0xff]  ;;  %v786_v59 = vpack.c.bf16 %v74_v52, %v73_v51  ;;  %v43_v61 = vld [vmem:[%s1372_s1 + $0xd0] sm:$0xff] }
   0xe   :  { %749 = vmatpush3.bf16.msra.mxu0 %v748_v34  ;;  %v57_v58 = vld [vmem:[%s1372_s1 + $0x140] sm:$0xff]  ;;  %v58_v60 = vld [vmem:[%s1372_s1 + $0x148] sm:$0xff]  ;;  %v44_v62 = vld [vmem:[%s1372_s1 + $0xd8] sm:$0xff]  ;;  %v756_v3 = vpack.c.bf16 %v26_v57, %v25_v56 }
   0xf   :  { %781 = vmatpush3.bf16.msra.mxu1 %v780_v38  ;;  %751 = vmatprep.subr.bf16.mxu0 %v750_v39  ;;  %v75_v1 = vld [vmem:[%s1372_s1 + $0x1d0] sm:$0xff]  ;;  %v76_v2 = vld [vmem:[%s1372_s1 + $0x1d8] sm:$0xff]  ;;  %v788_v4 = vpack.c.bf16 %v58_v60, %v57_v58  ;;  %v758_v5 = vpack.c.bf16 %v44_v62, %v43_v61  ;;  %v45_v11 = vld [vmem:[%s1372_s1 + $0xe0] sm:$0xff] }
  0x10   :  { %783 = vmatprep.subr.bf16.mxu1 %v782_v43  ;;  %v27_v6 = vld [vmem:[%s1372_s1 + $0x50] sm:$0xff]  ;;  %v28_v7 = vld [vmem:[%s1372_s1 + $0x58] sm:$0xff]  ;;  %v790_v9 = vpack.c.bf16 %v76_v2, %v75_v1  ;;  %v46_v12 = vld [vmem:[%s1372_s1 + $0xe8] sm:$0xff] }
  0x11   :  { %v59_v8 = vld [vmem:[%s1372_s1 + $0x150] sm:$0xff]  ;;  %v60_v10 = vld [vmem:[%s1372_s1 + $0x158] sm:$0xff]  ;;  %v77_v14 = vld [vmem:[%s1372_s1 + $0x1e0] sm:$0xff]  ;;  %v760_v16 = vpack.c.bf16 %v28_v7, %v27_v6  ;;  %v762_v19 = vpack.c.bf16 %v46_v12, %v45_v11 }
  0x12   :  { %753 = vmatpush3.bf16.msra.mxu0 %v752_v53  ;;  %v78_v15 = vld [vmem:[%s1372_s1 + $0x1e8] sm:$0xff]  ;;  %v29_v17 = vld [vmem:[%s1372_s1 + $0x60] sm:$0xff]  ;;  %v792_v18 = vpack.c.bf16 %v60_v10, %v59_v8  ;;  %v47_v25 = vld [vmem:[%s1372_s1 + $0xf0] sm:$0xff] }
  0x13   :  { %785 = vmatpush3.bf16.msra.mxu1 %v784_v54  ;;  %755 = vmatprep.subr.bf16.mxu0 %v754_v55  ;;  %v30_v20 = vld [vmem:[%s1372_s1 + $0x68] sm:$0xff]  ;;  %v61_v21 = vld [vmem:[%s1372_s1 + $0x160] sm:$0xff]  ;;  %v794_v23 = vpack.c.bf16 %v78_v15, %v77_v14  ;;  %v48_v26 = vld [vmem:[%s1372_s1 + $0xf8] sm:$0xff] }
  0x14   :  { %787 = vmatprep.subr.bf16.mxu1 %v786_v59  ;;  %v15_v22 = vld [vmem:[%s1371_s0] sm:$0xff]  ;;  %v62_v24 = vld [vmem:[%s1372_s1 + $0x168] sm:$0xff]  ;;  %v79_v29 = vld [vmem:[%s1372_s1 + $0x1f0] sm:$0xff]  ;;  %v764_v31 = vpack.c.bf16 %v30_v20, %v29_v17  ;;  %v766_v35 = vpack.c.bf16 %v48_v26, %v47_v25 }
  0x15   :  { %v154_v27 = vrot.slane %v15_v22, %v1084_v13  ;;  %v147_v28 = vcombine.high %v15_v22, %v15_v22  ;;  %v80_v30 = vld [vmem:[%s1372_s1 + $0x1f8] sm:$0xff]  ;;  %v796_v34 = vpack.c.bf16 %v62_v24, %v61_v21  ;;  %v31_v36 = vld [vmem:[%s1372_s1 + $0x70] sm:$0xff]  ;;  %v97_v42 = vld [vmem:[%s1372_s1 + $0x280] sm:$0xff] }
  0x16   :  { %757 = vmatpush3.bf16.msra.mxu0 %v756_v3  ;;  %v32_v37 = vld [vmem:[%s1372_s1 + $0x78] sm:$0xff]  ;;  %v63_v38 = vld [vmem:[%s1372_s1 + $0x170] sm:$0xff]  ;;  %v798_v39 = vpack.c.bf16 %v80_v30, %v79_v29  ;;  %v98_v43 = vld [vmem:[%s1372_s1 + $0x288] sm:$0xff] }
  0x17   :  { %789 = vmatpush3.bf16.msra.mxu1 %v788_v4  ;;  %759 = vmatprep.subr.bf16.mxu0 %v758_v5  ;;  %v162_v32 = vcombine.high %v154_v27, %v154_v27  ;;  %v161_v33 = vrot.slane %v147_v28, %v1084_v13  ;;  %v64_v40 = vld [vmem:[%s1372_s1 + $0x178] sm:$0xff]  ;;  %v129_v44 = vld [vmem:[%s1372_s1 + $0x380] sm:$0xff]  ;;  %v130_v45 = vld [vmem:[%s1372_s1 + $0x388] sm:$0xff]  ;;  %v768_v46 = vpack.c.bf16 %v32_v37, %v31_v36 }
  0x18   :  { %791 = vmatprep.subr.bf16.mxu1 %v790_v9  ;;  %v800_v47 = vpack.c.bf16 %v64_v40, %v63_v38  ;;  %v802_v48 = vpack.c.bf16 %v98_v43, %v97_v42  ;;  %v81_v49 = vld [vmem:[%s1372_s1 + $0x200] sm:$0xff]  ;;  %v82_v50 = vld [vmem:[%s1372_s1 + $0x208] sm:$0xff]  ;;  %v834_v52 = vpack.c.bf16 %v130_v45, %v129_v44  ;;  %v99_v54 = vld [vmem:[%s1372_s1 + $0x290] sm:$0xff] }
  0x19   :  { %253 = vmatprep.mubr.f32.mxu0 %v162_v32  ;;  %v163_v41 = vcombine.high %v161_v33, %v161_v33  ;;  %v113_v51 = vld [vmem:[%s1372_s1 + $0x300] sm:$0xff]  ;;  %v114_v53 = vld [vmem:[%s1372_s1 + $0x308] sm:$0xff]  ;;  %v100_v55 = vld [vmem:[%s1372_s1 + $0x298] sm:$0xff]  ;;  %v804_v58 = vpack.c.bf16 %v82_v50, %v81_v49 }
  0x1a   :  { %761 = vmatpush3.bf16.msra.mxu0 %v760_v16  ;;  %v131_v56 = vld [vmem:[%s1372_s1 + $0x390] sm:$0xff]  ;;  %v132_v57 = vld [vmem:[%s1372_s1 + $0x398] sm:$0xff]  ;;  %v836_v59 = vpack.c.bf16 %v114_v53, %v113_v51  ;;  %v806_v60 = vpack.c.bf16 %v100_v55, %v99_v54  ;;  %v101_v2 = vld [vmem:[%s1372_s1 + $0x2a0] sm:$0xff] }
  0x1b   :  { %793 = vmatpush3.bf16.msra.mxu1 %v792_v18  ;;  %763 = vmatprep.subr.bf16.mxu0 %v762_v19  ;;  %v83_v61 = vld [vmem:[%s1372_s1 + $0x210] sm:$0xff]  ;;  %v84_v62 = vld [vmem:[%s1372_s1 + $0x218] sm:$0xff]  ;;  %v838_v0 = vpack.c.bf16 %v132_v57, %v131_v56  ;;  %v102_v3 = vld [vmem:[%s1372_s1 + $0x2a8] sm:$0xff] }
  0x1c   :  { %795 = vmatprep.subr.bf16.mxu1 %v794_v23  ;;  %323 = vmatprep.mubr.f32.mxu1 %v163_v41  ;;  %v115_v63 = vld [vmem:[%s1372_s1 + $0x310] sm:$0xff]  ;;  %v116_v1 = vld [vmem:[%s1372_s1 + $0x318] sm:$0xff]  ;;  %v133_v4 = vld [vmem:[%s1372_s1 + $0x3a0] sm:$0xff]  ;;  %v808_v6 = vpack.c.bf16 %v84_v62, %v83_v61  ;;  %v810_v8 = vpack.c.bf16 %v102_v3, %v101_v2 }
  0x1d   :  { %v134_v5 = vld [vmem:[%s1372_s1 + $0x3a8] sm:$0xff]  ;;  %v840_v7 = vpack.c.bf16 %v116_v1, %v115_v63  ;;  %v85_v9 = vld [vmem:[%s1372_s1 + $0x220] sm:$0xff]  ;;  %v103_v15 = vld [vmem:[%s1372_s1 + $0x2b0] sm:$0xff] }
  0x1e   :  { %765 = vmatpush3.bf16.msra.mxu0 %v764_v31  ;;  %v86_v10 = vld [vmem:[%s1372_s1 + $0x228] sm:$0xff]  ;;  %v117_v11 = vld [vmem:[%s1372_s1 + $0x320] sm:$0xff]  ;;  %v842_v12 = vpack.c.bf16 %v134_v5, %v133_v4  ;;  %v104_v16 = vld [vmem:[%s1372_s1 + $0x2b8] sm:$0xff] }
  0x1f   :  { %797 = vmatpush3.bf16.msra.mxu1 %v796_v34  ;;  %767 = vmatprep.subr.bf16.mxu0 %v766_v35  ;;  %v118_v14 = vld [vmem:[%s1372_s1 + $0x328] sm:$0xff]  ;;  %v135_v17 = vld [vmem:[%s1372_s1 + $0x3b0] sm:$0xff]  ;;  %v136_v18 = vld [vmem:[%s1372_s1 + $0x3b8] sm:$0xff]  ;;  %v812_v19 = vpack.c.bf16 %v86_v10, %v85_v9  ;;  %v814_v22 = vpack.c.bf16 %v104_v16, %v103_v15 }
  0x20   :  { %799 = vmatprep.subr.bf16.mxu1 %v798_v39  ;;  %v87_v20 = vld [vmem:[%s1372_s1 + $0x230] sm:$0xff]  ;;  %v844_v21 = vpack.c.bf16 %v118_v14, %v117_v11  ;;  %v88_v23 = vld [vmem:[%s1372_s1 + $0x238] sm:$0xff]  ;;  %v846_v26 = vpack.c.bf16 %v136_v18, %v135_v17  ;;  %v106_v28 = vld [vmem:[%s1372_s1 + $0x2c8] sm:$0xff] }
  0x21   :  { %v119_v24 = vld [vmem:[%s1372_s1 + $0x330] sm:$0xff]  ;;  %v120_v25 = vld [vmem:[%s1372_s1 + $0x338] sm:$0xff]  ;;  %v137_v29 = vld [vmem:[%s1372_s1 + $0x3c0] sm:$0xff] }
  0x22   :  { %769 = vmatpush3.bf16.msra.mxu0 %v768_v46  ;;  %v138_v30 = vld [vmem:[%s1372_s1 + $0x3c8] sm:$0xff] }
  0x23   :  { %801 = vmatpush3.bf16.msra.mxu1 %v800_v47  ;;  %803 = vmatprep.subr.bf16.mxu0 %v802_v48  ;;  %v16_v31 = vld [vmem:[%s1371_s0 + $0x8] sm:$0xff] }
  0x24   :  { %835 = vmatprep.subr.bf16.mxu1 %v834_v52 }
  0x25   :  { %254 = vmatmul.mubr.f32.vlgmr.msra.gmra.mrb[0].mxu0 %v154_v27  ;;  %v105_v27 = vld [vmem:[%s1372_s1 + $0x2c0] sm:$0xff] }
  0x26   :  { %324 = vmatmul.mubr.f32.vlgmr.msra.gmra.mrb[0].mxu1 %v161_v33  ;;  %805 = vmatpush3.bf16.msra.mxu0 %v804_v58 }
  0x27   :  { %837 = vmatpush3.bf16.msra.mxu1 %v836_v59  ;;  %807 = vmatprep.subr.bf16.mxu0 %v806_v60 }
  0x28   :  { %839 = vmatprep.subr.bf16.mxu1 %v838_v0 }
  0x2a   :  { %809 = vmatpush3.bf16.msra.mxu0 %v808_v6 }
  0x2b   :  { %841 = vmatpush3.bf16.msra.mxu1 %v840_v7  ;;  %811 = vmatprep.subr.bf16.mxu0 %v810_v8 }
  0x2c   :  { %843 = vmatprep.subr.bf16.mxu1 %v842_v12 }
  0x2d   :  { %8 = vsyncpa [#allocation3], 0  ;;  %v816_v32 = vpack.c.bf16 %v88_v23, %v87_v20  ;;  %v1245_v33 = vrot.slane %v16_v31, %v1084_v13  ;;  %v164_v34 = vcombine.high %v16_v31, %v16_v31  ;;  %v848_v35 = vpack.c.bf16 %v120_v25, %v119_v24  ;;  %v89_v37 = vld [vmem:[%s1372_s1 + $0x240] sm:$0xff]  ;;  %v90_v38 = vld [vmem:[%s1372_s1 + $0x248] sm:$0xff] }
  0x2e   :  { %813 = vmatpush3.bf16.msra.mxu0 %v812_v19  ;;  %v818_v36 = vpack.c.bf16 %v106_v28, %v105_v27  ;;  %v121_v39 = vld [vmem:[%s1372_s1 + $0x340] sm:$0xff]  ;;  %v850_v40 = vpack.c.bf16 %v138_v30, %v137_v29  ;;  %v122_v41 = vld [vmem:[%s1372_s1 + $0x348] sm:$0xff]  ;;  %v107_v42 = vld [vmem:[%s1372_s1 + $0x2d0] sm:$0xff]  ;;  %v820_v48 = vpack.c.bf16 %v90_v38, %v89_v37  ;;  %vm911_vm0 = vmmov 0  }
  0x2f   :  { %845 = vmatpush3.bf16.msra.mxu1 %v844_v21  ;;  %815 = vmatprep.subr.bf16.mxu0 %v814_v22  ;;  %v108_v43 = vld [vmem:[%s1372_s1 + $0x2d8] sm:$0xff]  ;;  %v179_v44 = vcombine.high %v1245_v33, %v1245_v33  ;;  %v178_v45 = vrot.slane %v164_v34, %v1084_v13  ;;  %v139_v46 = vld [vmem:[%s1372_s1 + $0x3d0] sm:$0xff]  ;;  %v852_v50 = vpack.c.bf16 %v122_v41, %v121_v39  ;;  %v109_v56 = vld [vmem:[%s1372_s1 + $0x2e0] sm:$0xff]  ;;  %v910_v22 = vmov 0.0|0.0  }
  0x30   :  { %847 = vmatprep.subr.bf16.mxu1 %v846_v26  ;;  %v140_v47 = vld [vmem:[%s1372_s1 + $0x3d8] sm:$0xff]  ;;  %v822_v51 = vpack.c.bf16 %v108_v43, %v107_v42  ;;  %v91_v13 = vld [vmem:[%s1372_s1 + $0x250] sm:$0xff]  ;;  %v110_v57 = vld [vmem:[%s1372_s1 + $0x2e8] sm:$0xff]  ;;  %vm478_vm1 = vcmask 523264   ;;  %vm553_vm2 = vcmask 254976  }
  0x31   :  { %393 = vmatprep.mubr.f32.mxu0 %v179_v44  ;;  %v180_v49 = vcombine.high %v178_v45, %v178_v45  ;;  %v92_v52 = vld [vmem:[%s1372_s1 + $0x258] sm:$0xff]  ;;  %v123_v53 = vld [vmem:[%s1372_s1 + $0x350] sm:$0xff]  ;;  %v854_v54 = vpack.c.bf16 %v140_v47, %v139_v46  ;;  %v141_v58 = vld [vmem:[%s1372_s1 + $0x3e0] sm:$0xff]  ;;  %v826_v62 = vpack.c.bf16 %v110_v57, %v109_v56 }
  0x32   :  { %817 = vmatpush3.bf16.msra.mxu0 %v816_v32  ;;  %v124_v55 = vld [vmem:[%s1372_s1 + $0x358] sm:$0xff]  ;;  %v142_v59 = vld [vmem:[%s1372_s1 + $0x3e8] sm:$0xff]  ;;  %v824_v60 = vpack.c.bf16 %v92_v52, %v91_v13  ;;  %v93_v63 = vld [vmem:[%s1372_s1 + $0x260] sm:$0xff]  ;;  %v912_v32 = vmov 0.0  }
  0x33   :  { %849 = vmatpush3.bf16.msra.mxu1 %v848_v35  ;;  %819 = vmatprep.subr.bf16.mxu0 %v818_v36  ;;  %v856_v61 = vpack.c.bf16 %v124_v55, %v123_v53  ;;  %v94_v0 = vld [vmem:[%s1372_s1 + $0x268] sm:$0xff]  ;;  %v125_v1 = vld [vmem:[%s1372_s1 + $0x360] sm:$0xff]  ;;  %v858_v2 = vpack.c.bf16 %v142_v59, %v141_v58  ;;  %v111_v4 = vld [vmem:[%s1372_s1 + $0x2f0] sm:$0xff] }
  0x34   :  { %851 = vmatprep.subr.bf16.mxu1 %v850_v40  ;;  %463 = vmatprep.mubr.f32.mxu1 %v180_v49  ;;  %v126_v3 = vld [vmem:[%s1372_s1 + $0x368] sm:$0xff]  ;;  %v112_v5 = vld [vmem:[%s1372_s1 + $0x2f8] sm:$0xff]  ;;  %v143_v6 = vld [vmem:[%s1372_s1 + $0x3f0] sm:$0xff]  ;;  %v828_v8 = vpack.c.bf16 %v94_v0, %v93_v63 }
  0x35   :  { %v144_v7 = vld [vmem:[%s1372_s1 + $0x3f8] sm:$0xff]  ;;  %v860_v9 = vpack.c.bf16 %v126_v3, %v125_v1  ;;  %v830_v10 = vpack.c.bf16 %v112_v5, %v111_v4  ;;  %v95_v11 = vld [vmem:[%s1372_s1 + $0x270] sm:$0xff]  ;;  %v470_v19 = vld [vmem:[%s1373_s2] sm:$0xff] }
  0x36   :  { %821 = vmatpush3.bf16.msra.mxu0 %v820_v48  ;;  %v96_v12 = vld [vmem:[%s1372_s1 + $0x278] sm:$0xff]  ;;  %v862_v14 = vpack.c.bf16 %v144_v7, %v143_v6  ;;  %v127_v15 = vld [vmem:[%s1372_s1 + $0x370] sm:$0xff]  ;;  %v471_v20 = vld [vmem:[%s1373_s2 + $0x8] sm:$0xff] }
  0x37   :  { %853 = vmatpush3.bf16.msra.mxu1 %v852_v50  ;;  %823 = vmatprep.subr.bf16.mxu0 %v822_v51  ;;  %v128_v16 = vld [vmem:[%s1372_s1 + $0x378] sm:$0xff]  ;;  %v832_v17 = vpack.c.bf16 %v96_v12, %v95_v11  ;;  %v472_v21 = vld [vmem:[%s1373_s2 + $0x10] sm:$0xff]  ;;  %v867_v23 = vpack.c.bf16 %v471_v20, %v470_v19  ;;  %v474_v26 = vld [vmem:[%s1373_s2 + $0x20] sm:$0xff] }
  0x38   :  { %855 = vmatprep.subr.bf16.mxu1 %v854_v54  ;;  %v864_v18 = vpack.c.bf16 %v128_v16, %v127_v15  ;;  %v473_v24 = vld [vmem:[%s1373_s2 + $0x18] sm:$0xff]  ;;  %v475_v27 = vld [vmem:[%s1373_s2 + $0x28] sm:$0xff]  ;;  %v476_v29 = vld [vmem:[%s1373_s2 + $0x30] sm:$0xff] }
  0x39   :  { %v870_v25 = vpack.c.bf16 %v473_v24, %v472_v21  ;;  %v873_v28 = vpack.c.bf16 %v475_v27, %v474_v26  ;;  %v477_v30 = vld [vmem:[%s1373_s2 + $0x38] sm:$0xff]  ;;  %s913_s2 = smov [#allocation2]  }
  0x3a   :  { %825 = vmatpush3.bf16.msra.mxu0 %v824_v60  ;;  %v876_v31 = vpack.c.bf16 %v477_v30, %v476_v29  ;;  %s561_s14 = sshll.u32 %s913_s2, 4  ;;  %s562_s14 = int_to_ptr.vmem [resolvable:$true] %s561_s14 }
  0x3b   :  { %857 = vmatpush3.bf16.msra.mxu1 %v856_v61  ;;  %827 = vmatprep.subr.bf16.mxu0 %v826_v62  ;;  %s885_s15 = scalar_lea.vmem %s562_s14, 32  ;;  %p890_p1 = scmp.lt.s32.totalorder %s562_s14, %s562_s14 }
  0x3c   :  { %859 = vmatprep.subr.bf16.mxu1 %v858_v2  ;;  %p886_p0 = scmp.ne.s32.totalorder %s562_s14, %s885_s15  ;;  %p891_p2 = scmp.lt.s32.totalorder %s885_s15, %s885_s15 }
  0x3e   :  { %829 = vmatpush3.bf16.msra.mxu0 %v828_v8  ;;  %p892_p3 = por %p891_p2, %p890_p1 }
  0x3f   :  { %861 = vmatpush3.bf16.msra.mxu1 %v860_v9  ;;  %831 = vmatprep.subr.bf16.mxu0 %v830_v10 }
  0x40   :  { %863 = vmatprep.subr.bf16.mxu1 %v862_v14  ;;  %p893_p4 = pnand %p892_p3, %p886_p0 }
  0x42   :  { %833 = vmatpush3.bf16.msra.mxu0 %v832_v17 }
  0x43   :  { %865 = vmatpush3.bf16.msra.mxu1 %v864_v18  ;;  %866 = vmatprep.subr.bf16.mxu0 %v910_v22 }
  0x45   :  { %394 = vmatmul.mubr.f32.vlgmr.msra.gmra.mrb[2].mxu0 %v1245_v33 }
  0x46   :  { %464 = vmatmul.mubr.f32.vlgmr.msra.gmra.mrb[2].mxu1 %v178_v45  ;;  %868 = vmatpush3.bf16.msra.mxu0 %v867_v23 }
  0x47   :  { %869 = vmatprep.subr.bf16.mxu0 %v910_v22  ;;  %735 = vmatprep.mubr.msk.f32.mxu0 %vm911_vm0, %v912_v32 }
  0x4a   :  { %871 = vmatpush3.bf16.msra.mxu0 %v870_v25 }
  0x4b   :  { %872 = vmatprep.subr.bf16.mxu0 %v910_v22 }
  0x4e   :  { %874 = vmatpush3.bf16.msra.mxu0 %v873_v28 }
  0x4f   :  { %875 = vmatprep.subr.bf16.mxu0 %v910_v22 }
  0x52   :  { %877 = vmatpush3.bf16.msra.mxu0 %v876_v31 }
  0xf8   :  { %v602_v33 = vpop.f32.mrb[0].mxu0 }
  0xf9   :  { %v637_v34 = vpop.f32.mrb[0].mxu1  ;;  %v603_v35 = vpop.f32.mrb[1].mxu0 }
  0xfa   :  { %v604_v36 = vadd.f32 %v603_v35, %v602_v33  ;;  %v638_v37 = vpop.f32.mrb[1].mxu1 }
  0xfb   :  { %v639_v38 = vadd.f32 %v638_v37, %v637_v34 }
  0xfd   :  { %v326_v39 = vadd.f32 %v639_v38, %v604_v36 }
 0x118   :  { %v672_v40 = vpop.f32.mrb[2].mxu0 }
 0x119   :  { %v673_v41 = vpop.f32.mrb[3].mxu0  ;;  %v707_v42 = vpop.f32.mrb[2].mxu1 }
 0x11a   :  { %v674_v43 = vadd.f32 %v673_v41, %v672_v40  ;;  %v708_v44 = vpop.f32.mrb[3].mxu1 }
 0x11b   :  { %v709_v45 = vadd.f32 %v708_v44, %v707_v42 }
 0x11c   :  { %v396_v46 = vadd.f32 %v674_v43, %v326_v39 }
 0x11e   :  { %v466_v47 = vadd.f32 %v709_v45, %v396_v46 }
 0x120   :  { %v469_v48 = vmax.f32 %v466_v47, 0.0 }
 0x122   :  { %736 = vmatmul.mubr.msk.f32.vlgmr.msra.gmra.mrb[4].mxu0 %vm478_vm1, %v469_v48 }
 0x1f5   :  { %v548_v49 = vpop.f32.mrb[4].mxu0 }
 0x1f6   :  { %v552_v50 = vmax.f32 %v548_v49, 0.0  ;;  %v737_v51 = vpop.f32.mrb[5].mxu0 }
 0x1f8   :  { %554 = vst.msk [vmem:[#allocation2] sm:$0x3] %vm553_vm2, %v552_v50 }
 0x1f9   :  { %896 = shalt.err (!%p893_p4)
}
 0x1fa   :  { %s897_s18 = scalar_lea.hbm %s1374_s3, 32 }
 0x1fb   :  { %p898_p5 = scmp.ne.s32.totalorder %s1374_s3, %s897_s18  ;;  %p901_p6 = scmp.lt.u32.totalorder %s897_s18, %s1374_s3 }
 0x1fd   :  { %p903_p7 = pnand %p901_p6, %p898_p5 }
 0x1ff   :  { %906 = shalt.err (!%p903_p7)
}
 0x200   :  { %564 = dma.vmem_to_hbm [thread:$0]  %s562_s14, 32, %s1374_s3, [#allocation3]  }
 0x201   :  { %907 = dma.done.wait [#allocation3], 32  }
 0x202   :  { %908 = vsyncadd [#allocation3], 4294967264 }
 0x203   :  { %568 = vsyncpa [#allocation3], 1 }

</bundles_post_ra>
